<compile_context>
chip_gen: v7x
topology: tpu7x:2x2x1
jax: 0.10.0
libtpu: 0.0.40
codegen_flags: <defaults>
</compile_context>

<pallas_src>
import jax
import jax.numpy as jnp
from jax import lax
from jax.experimental import pallas as pl
from jax.experimental.pallas import tpu as pltpu


def _round_up(x, m):
    return ((x + m - 1) // m) * m


def _default_block_target_bytes():
    """Per-generation target for one input block (Pallas double-buffers it)."""
    try:
        kind = jax.devices()[0].device_kind.lower()
    except Exception:
        kind = ""
    if "v6" in kind or "v7" in kind:
        # 32 MiB scoped-VMEM default (of 128 MiB on v6e / 64 MiB on v7x):
        # 8 MiB blocks -> 16 MiB double-buffered, plenty of headroom.
        return 8 * 1024 * 1024
    # v5e (16 MiB scoped default) and older/unknown chips: stay conservative.
    return 4 * 1024 * 1024


def _make_single_pass_kernel(hw):
    """Path A: the whole hw extent is in the block; reduce it in one pass."""
    inv_hw = 1.0 / float(hw)

    def kernel(x_ref, out_ref):
        # x_ref: (br, hw) tile in VMEM; out_ref: (2, br) lane-dense tile.
        x = x_ref[...]
        mx = jnp.max(x, axis=-1)                                # input dtype, exact
        av = jnp.sum(x.astype(jnp.float32), axis=-1) * inv_hw   # f32 accumulate
        # TODO(synk): if a bundle dump shows the VALU/XLU reduce slots
        # saturating (small hw on v6e/v7x), move the sum onto the idle MXU via
        # jnp.dot(x, ones((hw, 1), x.dtype), preferred_element_type=f32).
        out_ref[...] = jnp.stack(
            [mx.astype(out_ref.dtype), av.astype(out_ref.dtype)], axis=0
        )

    return kernel


def _make_accum_kernel(hw, bhw, br):
    """Path B: hw split across an 'arbitrary' grid axis with f32 accumulators."""
    inv_hw = 1.0 / float(hw)

    def kernel(x_ref, out_ref, acc_ref):
        k = pl.program_id(1)

        @pl.when(k == 0)
        def _():
            acc_ref[...] = jnp.concatenate(
                [jnp.full((1, br), -jnp.inf, jnp.float32),
                 jnp.zeros((1, br), jnp.float32)],
                axis=0,
            )

        x = x_ref[...].astype(jnp.float32)                       # (br, bhw)
        # Mask the ragged last hw chunk (OOB lanes read garbage, never neutral).
        valid = hw - k * bhw
        lane = lax.broadcasted_iota(jnp.int32, (br, bhw), 1)
        in_bounds = lane < valid
        mx = jnp.max(jnp.where(in_bounds, x, -jnp.inf), axis=-1)  # (br,)
        sm = jnp.sum(jnp.where(in_bounds, x, 0.0), axis=-1)       # (br,)
        acc_ref[...] = jnp.stack(
            [jnp.maximum(acc_ref[0, :], mx), acc_ref[1, :] + sm], axis=0
        )

        @pl.when(k == pl.num_programs(1) - 1)
        def _():
            out_ref[...] = jnp.stack(
                [acc_ref[0, :], acc_ref[1, :] * inv_hw], axis=0
            ).astype(out_ref.dtype)

    return kernel


def adaptive_concat_pool2d(x, *, block_target_bytes=None):
    """x: (N, C, H, W) -> (N, 2*C, 1, 1) = concat([adaptive_max, adaptive_avg], axis=1)."""
    # TODO(synk): general output size > 1 (adaptive pooling windows) not
    # implemented; size=1 (the module default / global pooling) is covered.
    N, C, H, W = x.shape
    rows = N * C
    hw = H * W
    x2d = x.reshape(rows, hw)
    itemsize = x.dtype.itemsize

    if block_target_bytes is None:
        block_target_bytes = _default_block_target_bytes()

    # Per-row VMEM footprint of an input block (lane-padded to 128).
    row_bytes = _round_up(hw, 128) * itemsize

    cost = pl.CostEstimate(
        flops=2 * rows * hw,
        transcendentals=0,
        bytes_accessed=rows * hw * itemsize + 2 * rows * itemsize,
    )

    # Pick the row-tile size from padded bytes against the per-chip budget.
    if rows * row_bytes <= block_target_bytes:
        br = rows                                        # one block covers all rows
    elif 128 * row_bytes <= block_target_bytes:
        br = (block_target_bytes // row_bytes) // 128 * 128   # >=128, lane-aligned
    else:
        br = None                                        # hw too large -> Path B

    if br is not None:
        # --- Path A: single reduction pass over the full hw extent. ---
        grid = (pl.cdiv(rows, br),)
        pooled = pl.pallas_call(
            _make_single_pass_kernel(hw),
            out_shape=jax.ShapeDtypeStruct((2, rows), x.dtype),
            grid=grid,
            in_specs=[pl.BlockSpec((br, hw), lambda i: (i, 0))],
            out_specs=pl.BlockSpec((2, br), lambda i: (0, i)),
            compiler_params=pltpu.CompilerParams(
                # TODO(synk): on v7x, switch to pltpu.CORE_PARALLEL if a
                # profile shows only one TensorCore issuing the row tiles.
                dimension_semantics=("parallel",),
            ),
            cost_estimate=cost,
        )(x2d)
    else:
        # --- Path B: split hw, accumulate max/sum in f32 scratch. ---
        br = min(rows, 128)
        bhw = max(128, (block_target_bytes // (br * itemsize)) // 128 * 128)
        bhw = min(bhw, _round_up(hw, 128))
        if bhw >= hw:
            bhw = hw                                     # full-extent block is legal
        grid = (pl.cdiv(rows, br), pl.cdiv(hw, bhw))
        pooled = pl.pallas_call(
            _make_accum_kernel(hw, bhw, br),
            out_shape=jax.ShapeDtypeStruct((2, rows), x.dtype),
            grid=grid,
            in_specs=[pl.BlockSpec((br, bhw), lambda i, k: (i, k))],
            out_specs=pl.BlockSpec((2, br), lambda i, k: (0, i)),
            scratch_shapes=[pltpu.VMEM((2, br), jnp.float32)],
            compiler_params=pltpu.CompilerParams(
                dimension_semantics=("parallel", "arbitrary"),
            ),
            cost_estimate=cost,
        )(x2d)

    # pooled[0] = per-(n,c) max, pooled[1] = per-(n,c) mean.
    # Reorder to (N, [max C | avg C], 1, 1) to match torch.cat([max, avg], dim=1).
    out = pooled.reshape(2, N, C)
    out = jnp.transpose(out, (1, 0, 2)).reshape(N, 2 * C, 1, 1)
    return out


def _reference(x):
    ref_max = jnp.max(x, axis=(2, 3), keepdims=True)
    ref_avg = jnp.mean(x.astype(jnp.float32), axis=(2, 3), keepdims=True).astype(x.dtype)
    return jnp.concatenate([ref_max, ref_avg], axis=1)


if __name__ == "__main__":
    key = jax.random.PRNGKey(0)

    # Main case (module-typical NCHW shape).
    N, C, H, W = 2, 4, 16, 16
    x = jax.random.normal(key, (N, C, H, W), dtype=jnp.float32)
    out = jax.block_until_ready(adaptive_concat_pool2d(x))
    assert out.shape == (N, 2 * C, 1, 1), out.shape
    assert jnp.allclose(out, _reference(x), atol=1e-5, rtol=1e-5), "f32 mismatch"

    # 7x7 classifier head (hw=49, lane-padded reduce).
    x7 = jax.random.normal(jax.random.fold_in(key, 1), (2, 4, 7, 7), dtype=jnp.float32)
    out7 = jax.block_until_ready(adaptive_concat_pool2d(x7))
    assert jnp.allclose(out7, _reference(x7), atol=1e-5, rtol=1e-5), "7x7 mismatch"

    # bfloat16 path (max exact; mean within bf16 rounding).
    xb = jax.random.normal(jax.random.fold_in(key, 2), (2, 4, 16, 16), dtype=jnp.bfloat16)
    outb = jax.block_until_ready(adaptive_concat_pool2d(xb))
    assert jnp.allclose(outb.astype(jnp.float32),
                        _reference(xb).astype(jnp.float32),
                        atol=2e-2, rtol=2e-2), "bf16 mismatch"

    # Path A with a partial last row tile (rows not a multiple of the row block).
    xp = jax.random.normal(jax.random.fold_in(key, 3), (2, 96, 16, 16), dtype=jnp.float32)
    outp = jax.block_until_ready(
        adaptive_concat_pool2d(xp, block_target_bytes=128 * 1024))
    assert jnp.allclose(outp, _reference(xp), atol=1e-5, rtol=1e-5), "partial-tile mismatch"

    # Path B: hw split across the 'arbitrary' axis with a ragged last chunk.
    xl = jax.random.normal(jax.random.fold_in(key, 4), (2, 16, 30, 30), dtype=jnp.float32)
    outl = jax.block_until_ready(
        adaptive_concat_pool2d(xl, block_target_bytes=64 * 1024))
    assert jnp.allclose(outl, _reference(xl), atol=1e-5, rtol=1e-5), "hw-split mismatch"

    print("KERNEL_OK")
</pallas_src>

<mosaic_0001>
module attributes {stable_mosaic.version = 11 : i64} {
  func.func @kernel(%arg0: i32, %arg1: memref<8x256xf32, #tpu.memory_space<vmem>>, %arg2: memref<2x8xf32, #tpu.memory_space<vmem>>) attributes {dimension_semantics = [#tpu.dimension_semantics<parallel>], iteration_bounds = array<i64: 1>, scalar_prefetch = 0 : i64, scratch_operands = 0 : i64, tpu.core_type = #tpu.core_type<tc>, window_params = [{transform_indices = @transform_0, window_bounds = array<i64: 8, 256>}, {transform_indices = @transform_1, window_bounds = array<i64: 2, 8>}]} {
    %c0 = arith.constant 0 : index
    %c0_0 = arith.constant 0 : index
    %0 = vector.load %arg1[%c0, %c0_0] : memref<8x256xf32, #tpu.memory_space<vmem>>, vector<8x256xf32>
    %cst = arith.constant dense<0xFF800000> : vector<8xf32>
    %1 = vector.multi_reduction <maximumf>, %0, %cst [1] : vector<8x256xf32> to vector<8xf32>
    %cst_1 = arith.constant dense<0.000000e+00> : vector<8xf32>
    %2 = vector.multi_reduction <add>, %0, %cst_1 [1] : vector<8x256xf32> to vector<8xf32>
    %cst_2 = arith.constant 3.906250e-03 : f32
    %3 = vector.broadcast %cst_2 : f32 to vector<8xf32>
    %4 = arith.mulf %2, %3 : vector<8xf32>
    %5 = vector.shape_cast %1 : vector<8xf32> to vector<1x8xf32>
    %6 = vector.shape_cast %4 : vector<8xf32> to vector<1x8xf32>
    %7 = tpu.concatenate %5, %6 in 0 : vector<1x8xf32>, vector<1x8xf32> -> vector<2x8xf32>
    %c0_3 = arith.constant 0 : index
    %c0_4 = arith.constant 0 : index
    %8 = vector.load %arg2[%c0_3, %c0_4] : memref<2x8xf32, #tpu.memory_space<vmem>>, vector<2x8xf32>
    tpu.vector_store %arg2[%c0_3, %c0_4], %7 {strides = array<i32>} : memref<2x8xf32, #tpu.memory_space<vmem>>, vector<2x8xf32>,
    return
  }
  func.func @transform_0(%arg0: i32) -> (i32, i32) {
    %c0_i32 = arith.constant 0 : i32
    %c0_i32_0 = arith.constant 0 : i32
    return %arg0, %c0_i32 : i32, i32
  }
  func.func @transform_1(%arg0: i32) -> (i32, i32) {
    %c0_i32 = arith.constant 0 : i32
    %c0_i32_0 = arith.constant 0 : i32
    return %c0_i32, %arg0 : i32, i32
  }
}

</mosaic_0001>

<bundles_post_ra>
// kernel: tpu_custom_call.1
= control target key start
LH: loop header
LB: loop body
LE: loop exit
PB: predicated region body
PF: predicated region fallthrough
CT: control target
= control target key end

     0   :  { %6 = vsyncpa [#allocation3], 0  ;;  %s149_s0 = inlined_call_operand.hbm [shape: f32[8,256], index: 0, kind: input, shape index: {}]   ;;  %s150_s1 = inlined_call_operand.hbm [shape: f32[2,8], index: 1, kind: output, shape index: {}]  }
   0x1   :  { %7 = vsyncpa [#allocation4], 0  ;;  %s113_s6 = smov [#allocation2]   ;;  %s65_s10 = scalar_lea.hbm %s149_s0, 256 }
   0x2   :  { %s14_s7 = sshll.u32 %s113_s6, 4  ;;  %p66_p0 = scmp.ne.s32.totalorder %s149_s0, %s65_s10  ;;  %s15_s7 = int_to_ptr.vmem [resolvable:$true] %s14_s7 }
   0x3   :  { %p69_p1 = scmp.lt.u32.totalorder %s65_s10, %s149_s0 }
   0x5   :  { %p71_p2 = pnand %p69_p1, %p66_p0 }
   0x7   :  { %74 = shalt.err (!%p71_p2)
}
   0x8   :  { %s75_s15 = scalar_lea.vmem %s15_s7, 256  ;;  %p80_p4 = scmp.lt.s32.totalorder %s15_s7, %s15_s7 }
   0x9   :  { %p76_p3 = scmp.ne.s32.totalorder %s15_s7, %s75_s15  ;;  %p81_p5 = scmp.lt.s32.totalorder %s75_s15, %s75_s15 }
   0xb   :  { %p82_p6 = por %p81_p5, %p80_p4 }
   0xd   :  { %p83_p7 = pnand %p82_p6, %p76_p3 }
   0xf   :  { %86 = shalt.err (!%p83_p7)
}
  0x10   :  { %17 = dma.hbm_to_vmem [thread:$0]  %s149_s0, 256, %s15_s7, [#allocation3]  }
  0x11   :  { %109 = dma.done.wait [#allocation3], 256  }
  0x12   :  { %110 = vsyncadd [#allocation3], 4294967040  ;;  %v21_v0 = vld [vmem:[#allocation2] sm:$0xff]  ;;  %v22_v1 = vld [vmem:[#allocation2 + $0x8] sm:$0xff]  ;;  %v31_v4 = vlaneseq  ;;  %s114_s18 = smov [#allocation5]   ;;  %vm44_vm0 = vcmask 1040384  }
  0x13   :  { %v26_v2 = vadd.f32 %v22_v1, %v21_v0  ;;  %v23_v3 = vmax.f32 %v21_v0, %v22_v1  ;;  %s54_s19 = sshll.u32 %s114_s18, 4  ;;  %vm46_vm1 = vcmask 58368   ;;  %s55_s19 = int_to_ptr.vmem [resolvable:$true] %s54_s19 }
  0x14   :  { %v32_v5 = vand.u32 127, %v31_v4  ;;  %v34_v6 = vshrl.u32 %v31_v4, 7  ;;  %s87_s0 = scalar_lea.vmem %s55_s19, 32  ;;  %p92_p9 = scmp.lt.s32.totalorder %s55_s19, %s55_s19 }
  0x15   :  { %27 = vadd.xlane.f32.xlu0 %v26_v2  ;;  %p88_p8 = scmp.ne.s32.totalorder %s55_s19, %s87_s0  ;;  %p93_p10 = scmp.lt.s32.totalorder %s87_s0, %s87_s0 }
  0x16   :  { %v35_v8 = vsub.s32 %v32_v5, %v34_v6 }
  0x17   :  { %p94_p11 = por %p93_p10, %p92_p9 }
  0x19   :  { %24 = vmax.xlane.f32.xlu0 %v23_v3  ;;  %p95_p12 = pnand %p94_p11, %p88_p8 }
  0xa2   :  { %v28_v7 = vpop.xlane.xlu0 %27 }
  0xa3   :  { %v29_v9 = vmul.f32 0.00390625, %v28_v7 }
  0xa5   :  { %v42_v11 = vrot.slane %v29_v9, %v35_v8 }
  0xa6   :  { %v25_v10 = vpop.xlane.xlu0 %24 }
  0xa7   :  { %v36_v12 = vrot.slane %v25_v10, %v35_v8 }
  0xa9   :  { %v45_v13 = vsel %vm44_vm0, %v36_v12, %v42_v11 }
  0xaa   :  { %47 = vst.msk [vmem:[#allocation5] sm:$0x3] %vm46_vm1, %v45_v13 }
  0xab   :  { %98 = shalt.err (!%p95_p12)
}
  0xac   :  { %s99_s22 = scalar_lea.hbm %s150_s1, 32 }
  0xad   :  { %p100_p13 = scmp.ne.s32.totalorder %s150_s1, %s99_s22  ;;  %p103_p0 = scmp.lt.u32.totalorder %s99_s22, %s150_s1 }
  0xaf   :  { %p105_p1 = pnand %p103_p0, %p100_p13 }
  0xb1   :  { %108 = shalt.err (!%p105_p1)
}
  0xb2   :  { %57 = dma.vmem_to_hbm [thread:$0]  %s55_s19, 32, %s150_s1, [#allocation4]  }
  0xb3   :  { %111 = dma.done.wait [#allocation4], 32  }
  0xb4   :  { %112 = vsyncadd [#allocation4], 4294967264 }
  0xb5   :  { %61 = vsyncpa [#allocation3], 1 }
  0xb6   :  { %62 = vsyncpa [#allocation4], 1 }

</bundles_post_ra>
